<compile_context>
chip_gen: v7x
topology: tpu7x:2x2x1
jax: 0.10.0
libtpu: 0.0.40
codegen_flags: <defaults>
</compile_context>

<pallas_src>
import math

import jax
import jax.numpy as jnp
from jax.experimental import pallas as pl
from jax.experimental.pallas import tpu as pltpu


# ---------------------------------------------------------------------------
# Pallas kernel: backward of GradReverse  ->  -lambd * grad_output
# ---------------------------------------------------------------------------
_LANES = 1024            # lane-dense slab width (multiple of 128)
_MAX_BLOCK_ROWS = 1024   # 1024*1024*4B = 4 MiB f32 tile (v7x-safe cap)
_MIN_GRID_STEPS = 4      # keep pipeline depth + both v7x TensorCores busy
_VMEM_LIMIT = 32 << 20   # 2x(in) + 2x(out) 4 MiB tiles = 16 MiB; 32 MiB is
                         # safe on v5e/v6e/v7x and above v5e's 16 MiB default


def _ceil_div(a, b):
    return -(-a // b)


def _neg_scale_kernel(lambd_ref, g_ref, o_ref):
    # lambd stays in f32 (SMEM scalar); multiply promotes, then cast back.
    neg_lambd = -lambd_ref[0]
    o_ref[...] = (g_ref[...] * neg_lambd).astype(o_ref.dtype)


def _neg_scale_call(g, lambd):
    """Compute -lambd * g with a tiled, lane-dense Pallas kernel."""
    orig_shape, dtype = g.shape, g.dtype
    numel = math.prod(orig_shape)
    itemsize = jnp.dtype(dtype).itemsize

    lanes = _LANES
    rows = _ceil_div(numel, lanes)
    padded_numel = rows * lanes

    flat = g.reshape(-1)
    needs_pad = padded_numel != numel
    if needs_pad:
        # Tail-only pad (< 1024 elements). Common path skips this entirely.
        flat = jnp.pad(flat, (0, padded_numel - numel))
    slab = flat.reshape(rows, lanes)

    # Tile selection: ask for >= _MIN_GRID_STEPS grid steps before capping at
    # 4 MiB tiles, keep the row-block sublane-aligned (multiple of 8), and use
    # a single full-extent block for tiny slabs.  Pallas masks writes of the
    # partial last block (no reduction over the slab, so garbage OOB reads are
    # harmless).
    block_rows = min(_MAX_BLOCK_ROWS, max(8, _ceil_div(rows, _MIN_GRID_STEPS)))
    block_rows = _ceil_div(block_rows, 8) * 8
    if block_rows >= rows:
        block_rows = rows
    grid_rows = _ceil_div(rows, block_rows)

    lambd_arr = jnp.asarray(lambd, dtype=jnp.float32).reshape(1)

    out = pl.pallas_call(
        _neg_scale_kernel,
        out_shape=jax.ShapeDtypeStruct((rows, lanes), dtype),
        grid=(grid_rows,),
        in_specs=[
            pl.BlockSpec(memory_space=pltpu.SMEM),                 # lambd (f32)
            pl.BlockSpec((block_rows, lanes), lambda i: (i, 0)),   # grad slab
        ],
        out_specs=pl.BlockSpec((block_rows, lanes), lambda i: (i, 0)),
        # Write -lambd*g back into the slab buffer in place.
        input_output_aliases={1: 0},
        # Accurate mem-bound cost so XLA can overlap with neighboring bwd ops.
        cost_estimate=pl.CostEstimate(
            flops=numel,
            transcendentals=0,
            bytes_accessed=2 * numel * itemsize,
        ),
        compiler_params=pltpu.CompilerParams(
            dimension_semantics=("parallel",),   # v7x: shard across both TCs
            vmem_limit_bytes=_VMEM_LIMIT,
        ),
        # TODO(synk): on v7x, pipeline_mode=pl.Buffered(3) on the slab input is
        # a measure-and-keep tuning knob; left at the default double-buffer.
    )(lambd_arr, slab)

    if needs_pad:
        return out.reshape(-1)[:numel].reshape(orig_shape)
    return out.reshape(orig_shape)


# ---------------------------------------------------------------------------
# GradReverse as custom_vjp (mirrors torch.autograd.Function)
# ---------------------------------------------------------------------------
@jax.custom_vjp
def _grad_reverse(x, lambd):
    # Forward is a pure pass-through: no kernel, no HBM read/write.
    return x


def _grad_reverse_fwd(x, lambd):
    return x, lambd


def _grad_reverse_bwd(lambd, g):
    # PyTorch returns (grad_output.neg() * lambd, None); lambd gets no grad.
    return (_neg_scale_call(g, lambd), jnp.zeros_like(lambd))


_grad_reverse.defvjp(_grad_reverse_fwd, _grad_reverse_bwd)


def grad_reverse(x, lambd=1.0):
    """Identity in the forward pass; gradient is negated and scaled by lambd.

    lambd is traced as f32 data so a changing scheduler value does not retrace
    and is never quantized to the gradient dtype.
    """
    return _grad_reverse(x, jnp.asarray(lambd, dtype=jnp.float32))


# ---------------------------------------------------------------------------
# Module-equivalent wrapper
# ---------------------------------------------------------------------------
def identity_scheduler(global_step):
    return 1.0


class GradReverseLayer:
    """JAX equivalent of OpenDCAN's GradReverseLayer (forward = identity)."""

    def __init__(self, scheduler=identity_scheduler):
        self.scheduler = scheduler
        # Host-side step counter (matches .item() semantics without a
        # device->host sync on every call).
        self.global_step = 0.0
        self.training = True

    def __call__(self, x, lambd=None):
        if lambd is None:
            lambd = self.scheduler(self.global_step)
        if self.training:
            self.global_step += 1.0
        return grad_reverse(x, lambd)


# ---------------------------------------------------------------------------
# Demo
# ---------------------------------------------------------------------------
if __name__ == "__main__":
    key = jax.random.PRNGKey(0)
    # Small NCHW input consistent with a conv-feature-map use of the layer.
    x = jax.random.normal(key, (2, 4, 16, 16), dtype=jnp.float32)

    model = GradReverseLayer()

    # Forward pass: exact identity (no Pallas kernel involved).
    y = jax.block_until_ready(model(x))
    assert y.shape == x.shape and y.dtype == x.dtype
    assert bool(jnp.allclose(y, x))

    # Backward check: d/dx sum(2 * f(x)) = -2 * lambd  (common, pad-free path:
    # numel = 2048 is a multiple of 1024).
    def loss_fn(inp):
        return (grad_reverse(inp, 1.0) * 2.0).sum()

    g = jax.block_until_ready(jax.grad(loss_fn)(x))
    assert bool(jnp.allclose(g, -2.0 * jnp.ones_like(x)))

    # Docstring example from the PyTorch module (exercises the tail-padded
    # path: numel = 2 is not a multiple of 1024).
    sample = jnp.ones((2, 1), dtype=jnp.float32)
    g2 = jax.block_until_ready(jax.grad(loss_fn)(sample))
    assert bool(jnp.allclose(g2, -2.0 * jnp.ones_like(sample)))

    # Direct Pallas-kernel smoke test with a non-trivial lambd.
    gr = jax.block_until_ready(_neg_scale_call(x, jnp.float32(0.5)))
    assert bool(jnp.allclose(gr, -0.5 * x))

    print("KERNEL_OK")
</pallas_src>

<mosaic_0001>
module attributes {stable_mosaic.version = 11 : i64} {
  func.func @_neg_scale_kernel(%arg0: i32, %arg1: memref<1xf32, #tpu.memory_space<smem>>, %arg2: memref<2x1024xf32, #tpu.memory_space<vmem>>, %arg3: memref<2x1024xf32, #tpu.memory_space<vmem>>) attributes {dimension_semantics = [#tpu.dimension_semantics<parallel>], iteration_bounds = array<i64: 1>, scalar_prefetch = 0 : i64, scratch_operands = 0 : i64, tpu.core_type = #tpu.core_type<tc>, window_params = [{transform_indices = @transform_0, window_bounds = array<i64: 1>}, {transform_indices = @transform_1, window_bounds = array<i64: 2, 1024>}, {transform_indices = @transform_2, window_bounds = array<i64: 2, 1024>}]} {
    %c0 = arith.constant 0 : index
    %0 = memref.load %arg1[%c0] : memref<1xf32, #tpu.memory_space<smem>>
    %cst = arith.constant 0.000000e+00 : f32
    %1 = arith.subf %cst, %0 : f32
    %c0_0 = arith.constant 0 : index
    %c0_1 = arith.constant 0 : index
    %2 = vector.load %arg2[%c0_0, %c0_1] : memref<2x1024xf32, #tpu.memory_space<vmem>>, vector<2x1024xf32>
    %3 = vector.broadcast %1 : f32 to vector<2x1024xf32>
    %4 = arith.mulf %2, %3 : vector<2x1024xf32>
    %c0_2 = arith.constant 0 : index
    %c0_3 = arith.constant 0 : index
    %5 = vector.load %arg3[%c0_2, %c0_3] : memref<2x1024xf32, #tpu.memory_space<vmem>>, vector<2x1024xf32>
    tpu.vector_store %arg3[%c0_2, %c0_3], %4 {strides = array<i32>} : memref<2x1024xf32, #tpu.memory_space<vmem>>, vector<2x1024xf32>,
    return
  }
  func.func @transform_0(%arg0: i32) -> i32 {
    %c0_i32 = arith.constant 0 : i32
    %c0_i32_0 = arith.constant 0 : i32
    return %c0_i32 : i32
  }
  func.func @transform_1(%arg0: i32) -> (i32, i32) {
    %c0_i32 = arith.constant 0 : i32
    %c0_i32_0 = arith.constant 0 : i32
    return %arg0, %c0_i32 : i32, i32
  }
  func.func @transform_2(%arg0: i32) -> (i32, i32) {
    %c0_i32 = arith.constant 0 : i32
    %c0_i32_0 = arith.constant 0 : i32
    return %arg0, %c0_i32 : i32, i32
  }
}

</mosaic_0001>

<bundles_post_ra>
// kernel: tpu_custom_call.1
= control target key start
LH: loop header
LB: loop body
LE: loop exit
PB: predicated region body
PF: predicated region fallthrough
CT: control target
= control target key end

     0   :  { %8 = vsyncpa [#allocation4], 0  ;;  %s143_s0 = inlined_call_operand.<no memory space> [shape: f32[1], index: 0, kind: input, shape index: {}]   ;;  %s144_s1 = inlined_call_operand.hbm [shape: f32[2,1024], index: 1, kind: input, shape index: {}, may-alias: {1,2}]   ;;  %s145_s2 = inlined_call_operand.hbm [shape: f32[2,1024], index: 2, kind: output, shape index: {}, may-alias: {1,2}]  }
   0x1   :  { %9 = vsyncpa [#allocation5], 0  ;;  %s99_s9 = smov [#allocation3]   ;;  %s51_s13 = scalar_lea.hbm %s144_s1, 256 }
   0x2   :  { %s18_s10 = sshll.u32 %s99_s9, 4  ;;  %p52_p0 = scmp.ne.s32.totalorder %s144_s1, %s51_s13  ;;  %s19_s10 = int_to_ptr.vmem [resolvable:$true] %s18_s10 }
   0x3   :  { %p55_p1 = scmp.lt.u32.totalorder %s51_s13, %s144_s1 }
   0x5   :  { %p57_p2 = pnand %p55_p1, %p52_p0 }
   0x7   :  { %60 = shalt.err (!%p57_p2)
}
   0x8   :  { %s61_s18 = scalar_lea.vmem %s19_s10, 256  ;;  %p66_p4 = scmp.lt.s32.totalorder %s19_s10, %s19_s10 }
   0x9   :  { %p62_p3 = scmp.ne.s32.totalorder %s19_s10, %s61_s18  ;;  %p67_p5 = scmp.lt.s32.totalorder %s61_s18, %s61_s18 }
   0xb   :  { %p68_p6 = por %p67_p5, %p66_p4 }
   0xd   :  { %p69_p7 = pnand %p68_p6, %p62_p3 }
   0xf   :  { %72 = shalt.err (!%p69_p7)
}
  0x10   :  { %21 = dma.hbm_to_vmem [thread:$0]  %s144_s1, 256, %s19_s10, [#allocation4]  }
  0x11   :  { %95 = dma.done.wait [#allocation4], 256  }
  0x12   :  { %96 = vsyncadd [#allocation4], 4294967040  ;;  %s26_s23 = ssub.f32 0.0, %s143_s0  ;;  %s100_s24 = smov [#allocation6]   ;;  %v27_v1 = vld [vmem:[#allocation3] sm:$0xff]  ;;  %v28_v2 = vld [vmem:[#allocation3 + $0x8] sm:$0xff] }
  0x13   :  { %s40_s25 = sshll.u32 %s100_s24, 4  ;;  %s41_s25 = int_to_ptr.vmem [resolvable:$true] %s40_s25 }
  0x14   :  { %v29_v0 = vstv %s26_s23  ;;  %s73_s26 = scalar_lea.vmem %s41_s25, 256  ;;  %p78_p9 = scmp.lt.s32.totalorder %s41_s25, %s41_s25 }
  0x15   :  { %v30_v3 = vmul.f32 %v29_v0, %v27_v1  ;;  %v31_v4 = vmul.f32 %v29_v0, %v28_v2  ;;  %p74_p8 = scmp.ne.s32.totalorder %s41_s25, %s73_s26  ;;  %p79_p10 = scmp.lt.s32.totalorder %s73_s26, %s73_s26 }
  0x17   :  { %32 = vst [vmem:[#allocation6] sm:$0xff] %v30_v3  ;;  %33 = vst [vmem:[#allocation6 + $0x8] sm:$0xff] %v31_v4  ;;  %p80_p11 = por %p79_p10, %p78_p9 }
  0x19   :  { %p81_p12 = pnand %p80_p11, %p74_p8 }
  0x1b   :  { %84 = shalt.err (!%p81_p12)
}
  0x1c   :  { %s85_s0 = scalar_lea.hbm %s145_s2, 256 }
  0x1d   :  { %p86_p13 = scmp.ne.s32.totalorder %s145_s2, %s85_s0  ;;  %p89_p0 = scmp.lt.u32.totalorder %s85_s0, %s145_s2 }
  0x1f   :  { %p91_p1 = pnand %p89_p0, %p86_p13 }
  0x21   :  { %94 = shalt.err (!%p91_p1)
}
  0x22   :  { %43 = dma.vmem_to_hbm [thread:$0]  %s41_s25, 256, %s145_s2, [#allocation5]  }
  0x23   :  { %97 = dma.done.wait [#allocation5], 256  }
  0x24   :  { %98 = vsyncadd [#allocation5], 4294967040 }
  0x25   :  { %47 = vsyncpa [#allocation4], 1 }
  0x26   :  { %48 = vsyncpa [#allocation5], 1 }

</bundles_post_ra>
